<compile_context>
chip_gen: v7x
topology: tpu7x:2x2x1
jax: 0.10.0
libtpu: 0.0.40
codegen_flags: <defaults>
</compile_context>

<pallas_src>
import jax
import jax.numpy as jnp
from jax.experimental import pallas as pl
from jax.experimental.pallas import tpu as pltpu

_MIN = 1e-05
_MAX = 1e06

_LANE_CANDIDATES = (8192, 4096, 2048, 1024, 512, 256, 128)
_TILE_BYTE_BUDGET = 4 << 20          # ~4 MiB per block
_SMALL_SIZE_THRESHOLD = 1 << 14      # below this: plain jnp fast path
_VMEM_LIMIT_BYTES = 32 << 20         # raise v5e's 16 MiB default; <= physical on all gens


def _mean_act_kernel(x_ref, o_ref):
    # exp on EUP, clamp via min/max on VPU — one pass over the VMEM tile.
    x = x_ref[...]
    if x.dtype not in (jnp.float32, jnp.bfloat16):
        x = x.astype(jnp.float32)
    o_ref[...] = jnp.clip(jnp.exp(x), _MIN, _MAX).astype(o_ref.dtype)


def _round_up(n, m):
    return ((n + m - 1) // m) * m


def mean_act(x: jax.Array) -> jax.Array:
    """clamp(exp(x), 1e-5, 1e6) computed in a Pallas TPU kernel."""
    orig_shape = x.shape
    orig_dtype = x.dtype
    size = x.size

    # Tiny tensors: fixed pallas_call overhead dominates; let XLA fuse it.
    if size == 0 or size < _SMALL_SIZE_THRESHOLD:
        return jnp.clip(jnp.exp(x), _MIN, _MAX).astype(orig_dtype)

    flat = x.reshape(-1)

    # Widest lane-dense last dim that divides the flat size (no padding).
    lanes = None
    for cand in _LANE_CANDIDATES:
        if size % cand == 0:
            lanes = cand
            break

    tail = None
    if lanes is None:
        # Size not a multiple of 128: run the <128-element tail through plain
        # jnp (no full-tensor pad + slice copies); kernel handles the rest.
        lanes = 128
        main_size = (size // lanes) * lanes
        tail = flat[main_size:]
        flat = flat[:main_size]

    rows = flat.size // lanes
    x2d = flat.reshape(rows, lanes)

    itemsize = jnp.dtype(orig_dtype).itemsize
    # Rows per block from the byte budget, rounded down to a multiple of 8.
    blk_rows = max(8, (_TILE_BYTE_BUDGET // (lanes * itemsize)) // 8 * 8)
    if blk_rows >= rows:
        if rows >= 16:
            # Guarantee >=2 grid steps so the "parallel" axis shards across
            # both v7x TensorCores; ragged last block is masked by the pipeline.
            blk_rows = _round_up(pl.cdiv(rows, 2), 8)
        else:
            # Full-extent block: always legal, tiny, single step.
            blk_rows = rows
    grid = (pl.cdiv(rows, blk_rows),)

    out = pl.pallas_call(
        _mean_act_kernel,
        out_shape=jax.ShapeDtypeStruct((rows, lanes), orig_dtype),
        grid=grid,
        in_specs=[pl.BlockSpec((blk_rows, lanes), lambda i: (i, 0))],
        out_specs=pl.BlockSpec((blk_rows, lanes), lambda i: (i, 0)),
        compiler_params=pltpu.CompilerParams(
            dimension_semantics=("parallel",),
            vmem_limit_bytes=_VMEM_LIMIT_BYTES,
        ),
    )(x2d)

    out_flat = out.reshape(-1)
    if tail is not None:
        tail_out = jnp.clip(jnp.exp(tail), _MIN, _MAX).astype(orig_dtype)
        out_flat = jnp.concatenate([out_flat, tail_out])
    return out_flat.reshape(orig_shape)


def _reference(x):
    return jnp.clip(jnp.exp(x), _MIN, _MAX)


if __name__ == "__main__":
    key = jax.random.PRNGKey(0)
    k1, k2, k3 = jax.random.split(key, 3)

    # 1) Small NCHW-style input consistent with typical MeanAct usage
    #    (takes the fused-jnp fast path for tiny tensors).
    x_small = jax.random.normal(k1, (2, 4, 16, 16), dtype=jnp.float32) * 3.0
    y_small = mean_act(x_small)
    jax.block_until_ready(y_small)
    assert y_small.shape == x_small.shape
    assert jnp.allclose(y_small, _reference(x_small), rtol=1e-6, atol=1e-6), "mismatch (small)"

    # 2) Pallas path with a 2-step "parallel" grid (both v7x TensorCores):
    #    2*16*64*64 = 131072 elems -> lanes=8192, rows=16, two 8-row blocks.
    x_med = jax.random.normal(k2, (2, 16, 64, 64), dtype=jnp.float32) * 3.0
    y_med = mean_act(x_med)
    jax.block_until_ready(y_med)
    assert y_med.shape == x_med.shape
    assert jnp.allclose(y_med, _reference(x_med), rtol=1e-6, atol=1e-6), "mismatch (med)"

    # 3) Pallas path with size not a multiple of 128 (ragged last block in the
    #    kernel + <128-element jnp tail, no full-tensor pad/slice copies).
    x_odd = jax.random.normal(k3, (5, 67, 59), dtype=jnp.float32) * 3.0
    y_odd = mean_act(x_odd)
    jax.block_until_ready(y_odd)
    assert y_odd.shape == x_odd.shape
    assert jnp.allclose(y_odd, _reference(x_odd), rtol=1e-6, atol=1e-6), "mismatch (ragged/tail)"

    print("KERNEL_OK")
</pallas_src>

<mosaic_0001>
module attributes {stable_mosaic.version = 11 : i64} {
  func.func @_mean_act_kernel(%arg0: i32, %arg1: memref<8x8192xf32, #tpu.memory_space<vmem>>, %arg2: memref<8x8192xf32, #tpu.memory_space<vmem>>) attributes {dimension_semantics = [#tpu.dimension_semantics<parallel>], iteration_bounds = array<i64: 2>, scalar_prefetch = 0 : i64, scratch_operands = 0 : i64, tpu.core_type = #tpu.core_type<tc>, window_params = [{transform_indices = @transform_0, window_bounds = array<i64: 8, 8192>}, {transform_indices = @transform_1, window_bounds = array<i64: 8, 8192>}]} {
    %c0 = arith.constant 0 : index
    %c0_0 = arith.constant 0 : index
    %0 = vector.load %arg1[%c0, %c0_0] : memref<8x8192xf32, #tpu.memory_space<vmem>>, vector<8x8192xf32>
    %1 = math.exp %0 : vector<8x8192xf32>
    %cst = arith.constant 9.99999974E-6 : f32
    %cst_1 = arith.constant 1.000000e+06 : f32
    %2 = vector.broadcast %cst : f32 to vector<8x8192xf32>
    %3 = arith.maximumf %2, %1 : vector<8x8192xf32>
    %4 = vector.broadcast %cst_1 : f32 to vector<8x8192xf32>
    %5 = arith.minimumf %4, %3 : vector<8x8192xf32>
    %c0_2 = arith.constant 0 : index
    %c0_3 = arith.constant 0 : index
    %6 = vector.load %arg2[%c0_2, %c0_3] : memref<8x8192xf32, #tpu.memory_space<vmem>>, vector<8x8192xf32>
    tpu.vector_store %arg2[%c0_2, %c0_3], %5 {strides = array<i32>} : memref<8x8192xf32, #tpu.memory_space<vmem>>, vector<8x8192xf32>,
    return
  }
  func.func @transform_0(%arg0: i32) -> (i32, i32) {
    %c0_i32 = arith.constant 0 : i32
    %c0_i32_0 = arith.constant 0 : i32
    return %arg0, %c0_i32 : i32, i32
  }
  func.func @transform_1(%arg0: i32) -> (i32, i32) {
    %c0_i32 = arith.constant 0 : i32
    %c0_i32_0 = arith.constant 0 : i32
    return %arg0, %c0_i32 : i32, i32
  }
}

</mosaic_0001>

<bundles_post_ra>
// kernel: tpu_custom_call.1
= control target key start
LH: loop header
LB: loop body
LE: loop exit
PB: predicated region body
PF: predicated region fallthrough
CT: control target
= control target key end

     0   :  { %6 = vsyncpa [#allocation3], 0  ;;  %s1200_s0 = inlined_call_operand.hbm [shape: f32[16,8192], index: 0, kind: input, shape index: {}]   ;;  %s1201_s1 = inlined_call_operand.hbm [shape: f32[16,8192], index: 1, kind: output, shape index: {}]  }
   0x1   :  { %8 = vsyncpa [#allocation3 + $0x1], 0 }
   0x2   :  { %9 = vsyncpa [#allocation4], 0 }
   0x3   :  { %11 = vsyncpa [#allocation4 + $0x1], 0  ;;  %s902_s6 = smov 0   ;;  %s904_s7 = smov 0  }
   0x4   :  { %s906_s8 = smov 0   ;;  %s908_s9 = smov 0  }
   0x5 LB: > { %s923_s10 = sadd.s32 4294967295, %s888_s9   ;;  %s602_s11 = sadd.s32 4294967294, %s888_s9   ;;  %s888_s9 = sphi %s908_s9, %s1216_s9   ;;  %s884_s8 = sphi %s906_s8, %s1215_s8   ;;  %s880_s7 = sphi %s904_s7, %s1214_s7   ;;  %s876_s6 = sphi %s902_s6, %s1213_s6  }
   0x6   : > { %s927_s12 = sadd.s32 1, %s888_s9   ;;  %s24_s13 = sadd.s32 1, %s884_s8 }
   0x7   : > { %s21_s14 = ssub.s32 %s888_s9, %s927_s12  ;;  %p31_p0 = scmp.ne.s32.totalorder %s884_s8, %s880_s7 }
   0x8   : > { %p22_p1 = scmp.eq.s32.totalorder %s21_s14, 0  ;;  %p32_p2 = scmp.eq.s32.totalorder %s888_s9, 0 }
   0x9   : > { %p37_p3 = scmp.ne.s32.totalorder %s880_s7, %s876_s6  ;;  %p38_p4 = scmp.eq.s32.totalorder %s923_s10, 0 }
   0xa   : > { %s939_s15 = scalar_select %p22_p1, %s884_s8, %s24_s13  }
   0xb   : > { %p941_p5 = por %p32_p2, %p31_p0  ;;  %p945_p6 = por %p38_p4, %p37_p3 }
   0xc   : > { %p61_p7 = scmp.eq.s32.totalorder %s923_s10, 1  ;;  %p67_p8 = scmp.eq.s32.totalorder %s602_s11, 1 }
   0xd   : > { %p630_p10 = scmp.lt.s32.totalorder %s888_s9, 2  ;;  %s87_s20 = sand.u32 1, %s884_s8  }
   0xe   : > { %p952_p11 = por %p61_p7, %p31_p0  ;;  %p956_p12 = por %p67_p8, %p37_p3 }
   0xf   : > { %s616_s21 = sshll.u32 %s888_s9, 13  ;;  %s605_s22 = sshll.u32 %s87_s20, 9 }
  0x10   : > { %s1205_s18 = scalar_select %p952_p11, 1, 0 }
  0x11   : > { %s1206_s19 = scalar_select %p956_p12, 1, 0 }
  0x12   : > { %s965_s25 = scalar_lea.hbm %s1200_s0, %s616_s21  ;;  %s91_s26 = scalar_lea.vmem [#allocation2], %s605_s22 }
  0x13   : > { %s99_s27 = sshll.u32 %s91_s26, 4  ;;  %p969_p13 = pnand %p630_p10, %p941_p5  ;;  %s973_s27 = int_to_ptr.vmem [resolvable:$true] %s99_s27 }
  0x14   : > { %s88_s29 = scalar_lea.sflag [#allocation3], %s87_s20  ;;  %s792_s30 = scalar_lea.hbm %s965_s25, 8192 }
  0x15   : > { %p793_p2 = scmp.ne.s32.totalorder %s965_s25, %s792_s30  ;;  %p794_p3 = pneg %p969_p13 }
  0x16   : > { %s797_s4 = scalar_lea.hbm %s1200_s0, 16384  ;;  %p798_p5 = scmp.lt.u32.totalorder %s965_s25, %s1200_s0 }
  0x17   : > { %p795_p4 = pnand %p794_p3, %p793_p2  ;;  %p799_p8 = scmp.lt.u32.totalorder %s797_s4, %s792_s30 }
  0x18   : > { %p801_p9 = scmp.lt.u32.totalorder %s792_s30, %s965_s25 }
  0x19   : > { %p796_p7 = pneg %p795_p4  ;;  %p800_p10 = por %p799_p8, %p798_p5 }
  0x1b   : > { %p802_p0 = por %p801_p9, %p800_p10 }
  0x1d   : > { %p803_p1 = pnand %p802_p0, %p796_p7 }
  0x1f   : > { %806 = shalt.err (!%p803_p1)
}
  0x20   : > { %s807_s13 = scalar_lea.vmem %s973_s27, 8192  ;;  %s890_s14 = smov [#allocation2]  }
  0x21   : > { %p808_p2 = scmp.ne.s32.totalorder %s973_s27, %s807_s13  ;;  %s812_s16 = sshll.u32 %s890_s14, 4  ;;  %s813_s16 = int_to_ptr.vmem [resolvable:$false] %s812_s16 }
  0x22   : > { %s814_s20 = scalar_lea.vmem %s813_s16, 16384  ;;  %p815_p11 = scmp.lt.s32.totalorder %s973_s27, %s813_s16 }
  0x23   : > { %p810_p4 = pnand %p808_p2, %p794_p3  ;;  %p816_p5 = scmp.lt.s32.totalorder %s814_s20, %s807_s13 }
  0x25   : > { %p811_p12 = pneg %p810_p4  ;;  %p817_p8 = por %p816_p5, %p815_p11 }
  0x27   : > { %p818_p9 = pnand %p817_p8, %p811_p12 }
  0x29   : > { %821 = shalt.err (!%p818_p9)
}
  0x2a   : > { %625 = dma.hbm_to_vmem [thread:$0]  (!%p969_p13), %s965_s25, 8192, %s973_s27, %s88_s29  }
  0x2b   : > { %p1208_p0 = scmp.lt.s32.totalorder %s888_s9, 3  ;;  %p1209_p1 = scmp.ge.s32.totalorder %s888_s9, 1 }
  0x2d   : > { %p105_p3 = pnand %p1209_p1, %p1208_p0 }
  0x2e   : > { %s1007_s21 = sand.u32 (!%p105_p3), 1, %s880_s7  }
  0x2f   : > { %108 = sbr.rel (%p105_p3) target bundleno = 162 (0xa2), region = 24  ;;  %s609_s22 = sshll.u32 (!%p105_p3), %s1007_s21, 9 }
  0x30   : > { %s111_s23 = scalar_lea.sflag (!%p105_p3), [#allocation3], %s1007_s21  ;;  %s1013_s24 = scalar_lea.vmem (!%p105_p3), [#allocation2], %s609_s22 }
  0x36   : > { %867 = dma.done.wait (%p945_p6), %s111_s23, 8192  }
  0x37   : > { %869 = vsyncadd (%p945_p6), %s111_s23, 4294959104  ;;  %v133_v0 = vld [vmem:[%s1013_s24] sm:$0xff]  ;;  %v134_v1 = vld [vmem:[%s1013_s24 + $0x8] sm:$0xff]  ;;  %s1047_s17 = scalar_lea.vmem [#allocation5], %s609_s22  ;;  %s617_s25 = sshll.u32 %s923_s10, 13 }
  0x38   : > { %v135_v2 = vld [vmem:[%s1013_s24 + $0x10] sm:$0xff]  ;;  %v197_v3 = vmul.f32 1.442695, %v133_v0  ;;  %v199_v4 = vmul.f32 1.442695, %v134_v1  ;;  %v136_v6 = vld [vmem:[%s1013_s24 + $0x18] sm:$0xff]  ;;  %s1154_s29 = scalar_lea.hbm %s1201_s1, %s617_s25 }
  0x39   : > { %v201_v5 = vmul.f32 1.442695, %v135_v2  ;;  %v137_v7 = vld [vmem:[%s1013_s24 + $0x20] sm:$0xff]  ;;  %v138_v8 = vld [vmem:[%s1013_s24 + $0x28] sm:$0xff]  ;;  %v203_v9 = vmul.f32 1.442695, %v136_v6 }
  0x3a   : > { %664 = vpow2.f32 %v197_v3  ;;  %v205_v10 = vmul.f32 1.442695, %v137_v7  ;;  %v207_v11 = vmul.f32 1.442695, %v138_v8  ;;  %v139_v12 = vld [vmem:[%s1013_s24 + $0x30] sm:$0xff]  ;;  %v140_v13 = vld [vmem:[%s1013_s24 + $0x38] sm:$0xff] }
  0x3b   : > { %666 = vpow2.f32 %v199_v4  ;;  %v141_v14 = vld [vmem:[%s1013_s24 + $0x40] sm:$0xff]  ;;  %v209_v15 = vmul.f32 1.442695, %v139_v12  ;;  %v211_v16 = vmul.f32 1.442695, %v140_v13  ;;  %v142_v17 = vld [vmem:[%s1013_s24 + $0x48] sm:$0xff] }
  0x3c   : > { %668 = vpow2.f32 %v201_v5  ;;  %v143_v18 = vld [vmem:[%s1013_s24 + $0x50] sm:$0xff]  ;;  %v144_v19 = vld [vmem:[%s1013_s24 + $0x58] sm:$0xff]  ;;  %v213_v20 = vmul.f32 1.442695, %v141_v14  ;;  %v215_v21 = vmul.f32 1.442695, %v142_v17 }
  0x3d   : > { %670 = vpow2.f32 %v203_v9  ;;  %v145_v22 = vld [vmem:[%s1013_s24 + $0x60] sm:$0xff]  ;;  %v146_v23 = vld [vmem:[%s1013_s24 + $0x68] sm:$0xff]  ;;  %v147_v24 = vld [vmem:[%s1013_s24 + $0x70] sm:$0xff]  ;;  %v217_v25 = vmul.f32 1.442695, %v143_v18  ;;  %s532_s26 = sshll.u32 %s1047_s17, 4  ;;  %s1156_s26 = int_to_ptr.vmem [resolvable:$true] %s532_s26 }
  0x3e   : > { %672 = vpow2.f32 %v205_v10  ;;  %v219_v26 = vmul.f32 1.442695, %v144_v19  ;;  %v221_v27 = vmul.f32 1.442695, %v145_v22  ;;  %v223_v28 = vmul.f32 1.442695, %v146_v23 }
  0x3f   : > { %674 = vpow2.f32 %v207_v11  ;;  %v148_v29 = vld [vmem:[%s1013_s24 + $0x78] sm:$0xff]  ;;  %v149_v30 = vld [vmem:[%s1013_s24 + $0x80] sm:$0xff]  ;;  %v150_v31 = vld [vmem:[%s1013_s24 + $0x88] sm:$0xff]  ;;  %v225_v32 = vmul.f32 1.442695, %v147_v24  ;;  %s518_s10 = scalar_lea.sflag [#allocation4], %s1007_s21 }
  0x40   : > { %676 = vpow2.f32 %v209_v15  ;;  %v227_v33 = vmul.f32 1.442695, %v148_v29  ;;  %v229_v34 = vmul.f32 1.442695, %v149_v30  ;;  %v231_v35 = vmul.f32 1.442695, %v150_v31 }
  0x41   : > { %678 = vpow2.f32 %v211_v16  ;;  %v151_v36 = vld [vmem:[%s1013_s24 + $0x90] sm:$0xff]  ;;  %v152_v37 = vld [vmem:[%s1013_s24 + $0x98] sm:$0xff]  ;;  %v153_v38 = vld [vmem:[%s1013_s24 + $0xa0] sm:$0xff]  ;;  %s822_s30 = scalar_lea.vmem %s1156_s26, 8192  ;;  %p1210_p11 = scmp.ne.s32.totalorder %s1205_s18, 0 }
  0x42   : > { %680 = vpow2.f32 %v213_v20  ;;  %v233_v40 = vmul.f32 1.442695, %v151_v36  ;;  %v235_v41 = vmul.f32 1.442695, %v152_v37  ;;  %v237_v42 = vmul.f32 1.442695, %v153_v38  ;;  %p823_p6 = scmp.ne.s32.totalorder %s1156_s26, %s822_s30 }
  0x43   : > { %682 = vpow2.f32 %v215_v21  ;;  %v154_v45 = vld [vmem:[%s1013_s24 + $0xa8] sm:$0xff]  ;;  %v155_v46 = vld [vmem:[%s1013_s24 + $0xb0] sm:$0xff]  ;;  %v156_v47 = vld [vmem:[%s1013_s24 + $0xb8] sm:$0xff]  ;;  %s891_s2 = smov [#allocation5]  }
  0x44   : > { %v665_v39 = vpop.eup %664  ;;  %684 = vpow2.f32 %v217_v25  ;;  %v239_v50 = vmul.f32 1.442695, %v154_v45  ;;  %v241_v51 = vmul.f32 1.442695, %v155_v46  ;;  %v243_v55 = vmul.f32 1.442695, %v156_v47  ;;  %p824_p12 = pnand %p823_p6, %p1210_p11 }
  0x45   : > { %v667_v43 = vpop.eup %666  ;;  %v325_v44 = vmax.f32 %v665_v39, 1e-05  ;;  %686 = vpow2.f32 %v219_v26  ;;  %v157_v59 = vld [vmem:[%s1013_s24 + $0xc0] sm:$0xff]  ;;  %v158_v60 = vld [vmem:[%s1013_s24 + $0xc8] sm:$0xff]  ;;  %v159_v8 = vld [vmem:[%s1013_s24 + $0xd0] sm:$0xff]  ;;  %s826_s3 = sshll.u32 %s891_s2, 4  ;;  %s827_s3 = int_to_ptr.vmem [resolvable:$false] %s826_s3 }
  0x46   : > { %v669_v48 = vpop.eup %668  ;;  %v326_v49 = vmax.f32 %v667_v43, 1e-05  ;;  %688 = vpow2.f32 %v221_v27  ;;  %v245_v0 = vmul.f32 1.442695, %v157_v59  ;;  %v247_v4 = vmul.f32 1.442695, %v158_v60  ;;  %p825_p13 = pneg %p824_p12  ;;  %p829_p7 = scmp.lt.s32.totalorder %s1156_s26, %s827_s3 }
  0x47   : > { %v671_v52 = vpop.eup %670  ;;  %v389_v53 = vmin.f32 %v325_v44, 1000000.0  ;;  %v327_v54 = vmax.f32 %v669_v48, 1e-05  ;;  %690 = vpow2.f32 %v223_v28  ;;  %v160_v9 = vld [vmem:[%s1013_s24 + $0xd8] sm:$0xff]  ;;  %v161_v21 = vld [vmem:[%s1013_s24 + $0xe0] sm:$0xff] }
  0x48   : > { %v673_v56 = vpop.eup %672  ;;  %v390_v57 = vmin.f32 %v326_v49, 1000000.0  ;;  %v328_v58 = vmax.f32 %v671_v52, 1e-05  ;;  %692 = vpow2.f32 %v225_v32  ;;  %v249_v13 = vmul.f32 1.442695, %v159_v8 }
  0x49   : > { %v675_v61 = vpop.eup %674  ;;  %453 = vst [vmem:[%s1047_s17] sm:$0xff] %v389_v53  ;;  %v391_v62 = vmin.f32 %v327_v54, 1000000.0  ;;  %v329_v63 = vmax.f32 %v673_v56, 1e-05  ;;  %694 = vpow2.f32 %v227_v33  ;;  %v251_v17 = vmul.f32 1.442695, %v160_v9 }
  0x4a   : > { %v677_v1 = vpop.eup %676  ;;  %454 = vst [vmem:[%s1047_s17 + $0x8] sm:$0xff] %v390_v57  ;;  %v392_v2 = vmin.f32 %v328_v58, 1000000.0  ;;  %v330_v3 = vmax.f32 %v675_v61, 1e-05  ;;  %696 = vpow2.f32 %v229_v34  ;;  %v162_v22 = vld [vmem:[%s1013_s24 + $0xe8] sm:$0xff] }
  0x4b   : > { %v679_v5 = vpop.eup %678  ;;  %455 = vst [vmem:[%s1047_s17 + $0x10] sm:$0xff] %v391_v62  ;;  %v393_v6 = vmin.f32 %v329_v63, 1000000.0  ;;  %v331_v7 = vmax.f32 %v677_v1, 1e-05  ;;  %698 = vpow2.f32 %v231_v35  ;;  %v163_v34 = vld [vmem:[%s1013_s24 + $0xf0] sm:$0xff] }
  0x4c   : > { %v681_v10 = vpop.eup %680  ;;  %456 = vst [vmem:[%s1047_s17 + $0x18] sm:$0xff] %v392_v2  ;;  %v394_v11 = vmin.f32 %v330_v3, 1000000.0  ;;  %v332_v12 = vmax.f32 %v679_v5, 1e-05  ;;  %700 = vpow2.f32 %v233_v40  ;;  %v164_v35 = vld [vmem:[%s1013_s24 + $0xf8] sm:$0xff] }
  0x4d   : > { %v683_v14 = vpop.eup %682  ;;  %457 = vst [vmem:[%s1047_s17 + $0x20] sm:$0xff] %v393_v6  ;;  %v395_v15 = vmin.f32 %v331_v7, 1000000.0  ;;  %v333_v16 = vmax.f32 %v681_v10, 1e-05  ;;  %702 = vpow2.f32 %v235_v41  ;;  %v165_v47 = vld [vmem:[%s1013_s24 + $0x100] sm:$0xff] }
  0x4e   : > { %v685_v18 = vpop.eup %684  ;;  %458 = vst [vmem:[%s1047_s17 + $0x28] sm:$0xff] %v394_v11  ;;  %v396_v19 = vmin.f32 %v332_v12, 1000000.0  ;;  %v334_v20 = vmax.f32 %v683_v14, 1e-05  ;;  %704 = vpow2.f32 %v237_v42  ;;  %v166_v48 = vld [vmem:[%s1013_s24 + $0x108] sm:$0xff] }
  0x4f   : > { %v687_v23 = vpop.eup %686  ;;  %459 = vst [vmem:[%s1047_s17 + $0x30] sm:$0xff] %v395_v15  ;;  %v397_v24 = vmin.f32 %v333_v16, 1000000.0  ;;  %v335_v25 = vmax.f32 %v685_v18, 1e-05  ;;  %706 = vpow2.f32 %v239_v50  ;;  %v167_v60 = vld [vmem:[%s1013_s24 + $0x110] sm:$0xff] }
  0x50   : > { %v253_v26 = vmul.f32 1.442695, %v161_v21  ;;  %v689_v27 = vpop.eup %688  ;;  %460 = vst [vmem:[%s1047_s17 + $0x38] sm:$0xff] %v396_v19  ;;  %v398_v28 = vmin.f32 %v334_v20, 1000000.0  ;;  %708 = vpow2.f32 %v241_v51  ;;  %v168_v61 = vld [vmem:[%s1013_s24 + $0x118] sm:$0xff] }
  0x51   : > { %v336_v29 = vmax.f32 %v687_v23, 1e-05  ;;  %v255_v30 = vmul.f32 1.442695, %v162_v22  ;;  %v691_v31 = vpop.eup %690  ;;  %461 = vst [vmem:[%s1047_s17 + $0x40] sm:$0xff] %v397_v24  ;;  %710 = vpow2.f32 %v243_v55  ;;  %v169_v9 = vld [vmem:[%s1013_s24 + $0x120] sm:$0xff] }
  0x52   : > { %v399_v32 = vmin.f32 %v335_v25, 1000000.0  ;;  %v337_v33 = vmax.f32 %v689_v27, 1e-05  ;;  %v693_v36 = vpop.eup %692  ;;  %462 = vst [vmem:[%s1047_s17 + $0x48] sm:$0xff] %v398_v28  ;;  %712 = vpow2.f32 %v245_v0  ;;  %v170_v10 = vld [vmem:[%s1013_s24 + $0x128] sm:$0xff] }
  0x53   : > { %v400_v37 = vmin.f32 %v336_v29, 1000000.0  ;;  %v338_v38 = vmax.f32 %v691_v31, 1e-05  ;;  %v257_v39 = vmul.f32 1.442695, %v163_v34  ;;  %v695_v40 = vpop.eup %694  ;;  %714 = vpow2.f32 %v247_v4 }
  0x54   : > { %463 = vst [vmem:[%s1047_s17 + $0x50] sm:$0xff] %v399_v32  ;;  %v401_v41 = vmin.f32 %v337_v33, 1000000.0  ;;  %v339_v42 = vmax.f32 %v693_v36, 1e-05  ;;  %v697_v44 = vpop.eup %696  ;;  %716 = vpow2.f32 %v249_v13  ;;  %v171_v22 = vld [vmem:[%s1013_s24 + $0x130] sm:$0xff] }
  0x55   : > { %v259_v43 = vmul.f32 1.442695, %v164_v35  ;;  %464 = vst [vmem:[%s1047_s17 + $0x58] sm:$0xff] %v400_v37  ;;  %v402_v45 = vmin.f32 %v338_v38, 1000000.0  ;;  %v699_v49 = vpop.eup %698  ;;  %718 = vpow2.f32 %v251_v17  ;;  %v172_v23 = vld [vmem:[%s1013_s24 + $0x138] sm:$0xff] }
  0x56   : > { %v340_v46 = vmax.f32 %v695_v40, 1e-05  ;;  %465 = vst [vmem:[%s1047_s17 + $0x60] sm:$0xff] %v401_v41  ;;  %v403_v50 = vmin.f32 %v339_v42, 1000000.0  ;;  %v701_v53 = vpop.eup %700  ;;  %720 = vpow2.f32 %v253_v26  ;;  %v173_v35 = vld [vmem:[%s1013_s24 + $0x140] sm:$0xff] }
  0x57   : > { %v341_v51 = vmax.f32 %v697_v44, 1e-05  ;;  %v261_v52 = vmul.f32 1.442695, %v165_v47  ;;  %466 = vst [vmem:[%s1047_s17 + $0x68] sm:$0xff] %v402_v45  ;;  %v703_v57 = vpop.eup %702  ;;  %722 = vpow2.f32 %v255_v30  ;;  %v174_v36 = vld [vmem:[%s1013_s24 + $0x148] sm:$0xff] }
  0x58   : > { %v404_v54 = vmin.f32 %v340_v46, 1000000.0  ;;  %v342_v55 = vmax.f32 %v699_v49, 1e-05  ;;  %v263_v56 = vmul.f32 1.442695, %v166_v48  ;;  %v705_v62 = vpop.eup %704  ;;  %724 = vpow2.f32 %v257_v39 }
  0x59   : > { %467 = vst [vmem:[%s1047_s17 + $0x70] sm:$0xff] %v403_v50  ;;  %v405_v58 = vmin.f32 %v341_v51, 1000000.0  ;;  %v343_v59 = vmax.f32 %v701_v53, 1e-05  ;;  %v707_v2 = vpop.eup %706  ;;  %726 = vpow2.f32 %v259_v43  ;;  %v175_v48 = vld [vmem:[%s1013_s24 + $0x150] sm:$0xff] }
  0x5a   : > { %468 = vst [vmem:[%s1047_s17 + $0x78] sm:$0xff] %v404_v54  ;;  %v406_v63 = vmin.f32 %v342_v55, 1000000.0  ;;  %v344_v0 = vmax.f32 %v703_v57, 1e-05  ;;  %v709_v6 = vpop.eup %708  ;;  %728 = vpow2.f32 %v261_v52  ;;  %v176_v49 = vld [vmem:[%s1013_s24 + $0x158] sm:$0xff] }
  0x5b   : > { %v265_v1 = vmul.f32 1.442695, %v167_v60  ;;  %469 = vst [vmem:[%s1047_s17 + $0x80] sm:$0xff] %v405_v58  ;;  %v407_v3 = vmin.f32 %v343_v59, 1000000.0  ;;  %v711_v11 = vpop.eup %710  ;;  %730 = vpow2.f32 %v263_v56  ;;  %s828_s4 = scalar_lea.vmem %s827_s3, 16384 }
  0x5c   : > { %v345_v4 = vmax.f32 %v705_v62, 1e-05  ;;  %v267_v5 = vmul.f32 1.442695, %v168_v61  ;;  %470 = vst [vmem:[%s1047_s17 + $0x88] sm:$0xff] %v406_v63  ;;  %v713_v15 = vpop.eup %712  ;;  %v177_v61 = vld [vmem:[%s1013_s24 + $0x160] sm:$0xff]  ;;  %p830_p10 = scmp.lt.s32.totalorder %s828_s4, %s822_s30 }
  0x5d   : > { %v408_v7 = vmin.f32 %v344_v0, 1000000.0  ;;  %v346_v8 = vmax.f32 %v707_v2, 1e-05  ;;  %471 = vst [vmem:[%s1047_s17 + $0x90] sm:$0xff] %v407_v3  ;;  %732 = vpow2.f32 %v265_v1  ;;  %v715_v19 = vpop.eup %714  ;;  %v178_v62 = vld [vmem:[%s1013_s24 + $0x168] sm:$0xff] }
  0x5e   : > { %v409_v12 = vmin.f32 %v345_v4, 1000000.0  ;;  %v347_v13 = vmax.f32 %v709_v6, 1e-05  ;;  %v269_v14 = vmul.f32 1.442695, %v169_v9  ;;  %734 = vpow2.f32 %v267_v5  ;;  %v717_v24 = vpop.eup %716  ;;  %p831_p2 = por %p830_p10, %p829_p7 }
  0x5f   : > { %472 = vst [vmem:[%s1047_s17 + $0x98] sm:$0xff] %v408_v7  ;;  %v410_v16 = vmin.f32 %v346_v8, 1000000.0  ;;  %v348_v17 = vmax.f32 %v711_v11, 1e-05  ;;  %v719_v28 = vpop.eup %718  ;;  %v180_v11 = vld [vmem:[%s1013_s24 + $0x178] sm:$0xff] }
  0x60   : > { %v271_v18 = vmul.f32 1.442695, %v170_v10  ;;  %473 = vst [vmem:[%s1047_s17 + $0xa0] sm:$0xff] %v409_v12  ;;  %v411_v20 = vmin.f32 %v347_v13, 1000000.0  ;;  %736 = vpow2.f32 %v269_v14  ;;  %v721_v32 = vpop.eup %720  ;;  %v179_v10 = vld [vmem:[%s1013_s24 + $0x170] sm:$0xff]  ;;  %p832_p4 = pnand %p831_p2, %p825_p13 }
  0x61   : > { %v349_v21 = vmax.f32 %v713_v15, 1e-05  ;;  %474 = vst [vmem:[%s1047_s17 + $0xa8] sm:$0xff] %v410_v16  ;;  %v412_v25 = vmin.f32 %v348_v17, 1000000.0  ;;  %v723_v37 = vpop.eup %722 }
  0x62   : > { %v350_v26 = vmax.f32 %v715_v19, 1e-05  ;;  %v273_v27 = vmul.f32 1.442695, %v171_v22  ;;  %475 = vst [vmem:[%s1047_s17 + $0xb0] sm:$0xff] %v411_v20  ;;  %738 = vpow2.f32 %v271_v18  ;;  %v725_v41 = vpop.eup %724  ;;  %v181_v22 = vld [vmem:[%s1013_s24 + $0x180] sm:$0xff] }
  0x63   : > { %v413_v29 = vmin.f32 %v349_v21, 1000000.0  ;;  %v351_v30 = vmax.f32 %v717_v24, 1e-05  ;;  %v275_v31 = vmul.f32 1.442695, %v172_v23  ;;  %v727_v45 = vpop.eup %726 }
  0x64   : > { %476 = vst [vmem:[%s1047_s17 + $0xb8] sm:$0xff] %v412_v25  ;;  %v414_v33 = vmin.f32 %v350_v26, 1000000.0  ;;  %v352_v34 = vmax.f32 %v719_v28, 1e-05  ;;  %740 = vpow2.f32 %v273_v27  ;;  %v729_v50 = vpop.eup %728  ;;  %v182_v23 = vld [vmem:[%s1013_s24 + $0x188] sm:$0xff] }
  0x65   : > { %477 = vst [vmem:[%s1047_s17 + $0xc0] sm:$0xff] %v413_v29  ;;  %v415_v38 = vmin.f32 %v351_v30, 1000000.0  ;;  %v353_v39 = vmax.f32 %v721_v32, 1e-05  ;;  %742 = vpow2.f32 %v275_v31  ;;  %v731_v54 = vpop.eup %730  ;;  %v183_v31 = vld [vmem:[%s1013_s24 + $0x190] sm:$0xff] }
  0x66   : > { %v277_v40 = vmul.f32 1.442695, %v173_v35  ;;  %478 = vst [vmem:[%s1047_s17 + $0xc8] sm:$0xff] %v414_v33  ;;  %v416_v42 = vmin.f32 %v352_v34, 1000000.0  ;;  %v184_v32 = vld [vmem:[%s1013_s24 + $0x198] sm:$0xff] }
  0x67   : > { %v354_v43 = vmax.f32 %v723_v37, 1e-05  ;;  %v279_v44 = vmul.f32 1.442695, %v174_v36  ;;  %479 = vst [vmem:[%s1047_s17 + $0xd0] sm:$0xff] %v415_v38  ;;  %v733_v58 = vpop.eup %732  ;;  %v185_v38 = vld [vmem:[%s1013_s24 + $0x1a0] sm:$0xff] }
  0x68   : > { %v417_v46 = vmin.f32 %v353_v39, 1000000.0  ;;  %v355_v47 = vmax.f32 %v725_v41, 1e-05  ;;  %744 = vpow2.f32 %v277_v40  ;;  %480 = vst [vmem:[%s1047_s17 + $0xd8] sm:$0xff] %v416_v42  ;;  %v735_v63 = vpop.eup %734  ;;  %v186_v39 = vld [vmem:[%s1013_s24 + $0x1a8] sm:$0xff] }
  0x69   : > { %v418_v51 = vmin.f32 %v354_v43, 1000000.0  ;;  %v356_v52 = vmax.f32 %v727_v45, 1e-05  ;;  %746 = vpow2.f32 %v279_v44  ;;  %v281_v53 = vmul.f32 1.442695, %v175_v48 }
  0x6a   : > { %481 = vst [vmem:[%s1047_s17 + $0xe0] sm:$0xff] %v417_v46  ;;  %v419_v55 = vmin.f32 %v355_v47, 1000000.0  ;;  %v357_v56 = vmax.f32 %v729_v50, 1e-05  ;;  %v737_v3 = vpop.eup %736  ;;  %v187_v40 = vld [vmem:[%s1013_s24 + $0x1b0] sm:$0xff] }
  0x6b   : > { %v283_v57 = vmul.f32 1.442695, %v176_v49  ;;  %482 = vst [vmem:[%s1047_s17 + $0xe8] sm:$0xff] %v418_v51  ;;  %v420_v59 = vmin.f32 %v356_v52, 1000000.0  ;;  %748 = vpow2.f32 %v281_v53  ;;  %v188_v50 = vld [vmem:[%s1013_s24 + $0x1b8] sm:$0xff] }
  0x6c   : > { %v358_v60 = vmax.f32 %v731_v54, 1e-05  ;;  %483 = vst [vmem:[%s1047_s17 + $0xf0] sm:$0xff] %v419_v55  ;;  %v421_v0 = vmin.f32 %v357_v56, 1000000.0  ;;  %v739_v7 = vpop.eup %738  ;;  %v189_v51 = vld [vmem:[%s1013_s24 + $0x1c0] sm:$0xff] }
  0x6d   : > { %v359_v1 = vmax.f32 %v733_v58, 1e-05  ;;  %750 = vpow2.f32 %v283_v57  ;;  %v285_v2 = vmul.f32 1.442695, %v177_v61  ;;  %484 = vst [vmem:[%s1047_s17 + $0xf8] sm:$0xff] %v420_v59  ;;  %v190_v52 = vld [vmem:[%s1013_s24 + $0x1c8] sm:$0xff] }
  0x6e   : > { %v422_v4 = vmin.f32 %v358_v60, 1000000.0  ;;  %v360_v5 = vmax.f32 %v735_v63, 1e-05  ;;  %v287_v6 = vmul.f32 1.442695, %v178_v62  ;;  %v741_v12 = vpop.eup %740 }
  0x6f   : > { %485 = vst [vmem:[%s1047_s17 + $0x100] sm:$0xff] %v421_v0  ;;  %v423_v8 = vmin.f32 %v359_v1, 1000000.0  ;;  %v361_v9 = vmax.f32 %v737_v3, 1e-05  ;;  %752 = vpow2.f32 %v285_v2  ;;  %v743_v16 = vpop.eup %742  ;;  %v191_v62 = vld [vmem:[%s1013_s24 + $0x1d0] sm:$0xff] }
  0x70   : > { %486 = vst [vmem:[%s1047_s17 + $0x108] sm:$0xff] %v422_v4  ;;  %v424_v13 = vmin.f32 %v360_v5, 1000000.0  ;;  %v362_v14 = vmax.f32 %v739_v7, 1e-05  ;;  %754 = vpow2.f32 %v287_v6  ;;  %v192_v63 = vld [vmem:[%s1013_s24 + $0x1d8] sm:$0xff] }
  0x71   : > { %v289_v15 = vmul.f32 1.442695, %v179_v10  ;;  %487 = vst [vmem:[%s1047_s17 + $0x110] sm:$0xff] %v423_v8  ;;  %v425_v17 = vmin.f32 %v361_v9, 1000000.0  ;;  %v193_v0 = vld [vmem:[%s1013_s24 + $0x1e0] sm:$0xff] }
  0x72   : > { %v363_v18 = vmax.f32 %v741_v12, 1e-05  ;;  %v291_v19 = vmul.f32 1.442695, %v180_v11  ;;  %488 = vst [vmem:[%s1047_s17 + $0x118] sm:$0xff] %v424_v13  ;;  %v745_v24 = vpop.eup %744  ;;  %v194_v10 = vld [vmem:[%s1013_s24 + $0x1e8] sm:$0xff] }
  0x73   : > { %v426_v20 = vmin.f32 %v362_v14, 1000000.0  ;;  %v364_v21 = vmax.f32 %v743_v16, 1e-05  ;;  %756 = vpow2.f32 %v289_v15  ;;  %489 = vst [vmem:[%s1047_s17 + $0x120] sm:$0xff] %v425_v17  ;;  %v747_v28 = vpop.eup %746  ;;  %v195_v11 = vld [vmem:[%s1013_s24 + $0x1f0] sm:$0xff] }
  0x74   : > { %v427_v25 = vmin.f32 %v363_v18, 1000000.0  ;;  %758 = vpow2.f32 %v291_v19  ;;  %v293_v26 = vmul.f32 1.442695, %v181_v22  ;;  %v295_v27 = vmul.f32 1.442695, %v182_v23 }
  0x75   : > { %490 = vst [vmem:[%s1047_s17 + $0x128] sm:$0xff] %v426_v20  ;;  %v428_v29 = vmin.f32 %v364_v21, 1000000.0  ;;  %v365_v30 = vmax.f32 %v745_v24, 1e-05  ;;  %v749_v36 = vpop.eup %748  ;;  %v196_v12 = vld [vmem:[%s1013_s24 + $0x1f8] sm:$0xff] }
  0x76   : > { %491 = vst [vmem:[%s1047_s17 + $0x130] sm:$0xff] %v427_v25  ;;  %v366_v33 = vmax.f32 %v747_v28, 1e-05  ;;  %760 = vpow2.f32 %v293_v26  ;;  %v297_v34 = vmul.f32 1.442695, %v183_v31 }
  0x77   : > { %v299_v35 = vmul.f32 1.442695, %v184_v32  ;;  %492 = vst [vmem:[%s1047_s17 + $0x138] sm:$0xff] %v428_v29  ;;  %v429_v37 = vmin.f32 %v365_v30, 1000000.0  ;;  %762 = vpow2.f32 %v295_v27  ;;  %v751_v41 = vpop.eup %750 }
  0x78   : > { %v430_v42 = vmin.f32 %v366_v33, 1000000.0  ;;  %v367_v43 = vmax.f32 %v749_v36, 1e-05  ;;  %764 = vpow2.f32 %v297_v34  ;;  %v301_v44 = vmul.f32 1.442695, %v185_v38 }
  0x79   : > { %493 = vst [vmem:[%s1047_s17 + $0x140] sm:$0xff] %v429_v37  ;;  %v368_v45 = vmax.f32 %v751_v41, 1e-05  ;;  %766 = vpow2.f32 %v299_v35  ;;  %v303_v46 = vmul.f32 1.442695, %v186_v39  ;;  %v753_v48 = vpop.eup %752 }
  0x7a   : > { %v305_v47 = vmul.f32 1.442695, %v187_v40  ;;  %494 = vst [vmem:[%s1047_s17 + $0x148] sm:$0xff] %v430_v42  ;;  %v431_v49 = vmin.f32 %v367_v43, 1000000.0  ;;  %768 = vpow2.f32 %v301_v44  ;;  %v755_v53 = vpop.eup %754 }
  0x7b   : > { %v432_v54 = vmin.f32 %v368_v45, 1000000.0  ;;  %v369_v55 = vmax.f32 %v753_v48, 1e-05  ;;  %770 = vpow2.f32 %v303_v46  ;;  %v307_v56 = vmul.f32 1.442695, %v188_v50 }
  0x7c   : > { %495 = vst [vmem:[%s1047_s17 + $0x150] sm:$0xff] %v431_v49  ;;  %v370_v57 = vmax.f32 %v755_v53, 1e-05  ;;  %772 = vpow2.f32 %v305_v47  ;;  %v309_v58 = vmul.f32 1.442695, %v189_v51 }
  0x7d   : > { %v311_v59 = vmul.f32 1.442695, %v190_v52  ;;  %v757_v60 = vpop.eup %756  ;;  %496 = vst [vmem:[%s1047_s17 + $0x158] sm:$0xff] %v432_v54  ;;  %v433_v61 = vmin.f32 %v369_v55, 1000000.0  ;;  %774 = vpow2.f32 %v307_v56 }
  0x7e   : > { %v759_v1 = vpop.eup %758  ;;  %v434_v2 = vmin.f32 %v370_v57, 1000000.0  ;;  %v371_v3 = vmax.f32 %v757_v60, 1e-05  ;;  %776 = vpow2.f32 %v309_v58  ;;  %v313_v4 = vmul.f32 1.442695, %v191_v62 }
  0x7f   : > { %497 = vst [vmem:[%s1047_s17 + $0x160] sm:$0xff] %v433_v61  ;;  %v372_v5 = vmax.f32 %v759_v1, 1e-05  ;;  %778 = vpow2.f32 %v311_v59  ;;  %v315_v6 = vmul.f32 1.442695, %v192_v63 }
  0x80   : > { %v317_v7 = vmul.f32 1.442695, %v193_v0  ;;  %v761_v8 = vpop.eup %760  ;;  %498 = vst [vmem:[%s1047_s17 + $0x168] sm:$0xff] %v434_v2  ;;  %v435_v9 = vmin.f32 %v371_v3, 1000000.0  ;;  %780 = vpow2.f32 %v313_v4 }
  0x81   : > { %v763_v13 = vpop.eup %762  ;;  %v436_v14 = vmin.f32 %v372_v5, 1000000.0  ;;  %v373_v15 = vmax.f32 %v761_v8, 1e-05  ;;  %782 = vpow2.f32 %v315_v6  ;;  %v319_v16 = vmul.f32 1.442695, %v194_v10 }
  0x82   : > { %v765_v17 = vpop.eup %764  ;;  %499 = vst [vmem:[%s1047_s17 + $0x170] sm:$0xff] %v435_v9  ;;  %v374_v18 = vmax.f32 %v763_v13, 1e-05  ;;  %784 = vpow2.f32 %v317_v7  ;;  %v321_v19 = vmul.f32 1.442695, %v195_v11 }
  0x83   : > { %v323_v20 = vmul.f32 1.442695, %v196_v12  ;;  %v767_v21 = vpop.eup %766  ;;  %500 = vst [vmem:[%s1047_s17 + $0x178] sm:$0xff] %v436_v14  ;;  %v437_v22 = vmin.f32 %v373_v15, 1000000.0  ;;  %786 = vpow2.f32 %v319_v16 }
  0x84   : > { %v375_v23 = vmax.f32 %v765_v17, 1e-05  ;;  %v769_v24 = vpop.eup %768  ;;  %v438_v25 = vmin.f32 %v374_v18, 1000000.0  ;;  %v376_v26 = vmax.f32 %v767_v21, 1e-05  ;;  %788 = vpow2.f32 %v321_v19 }
  0x85   : > { %v771_v27 = vpop.eup %770  ;;  %501 = vst [vmem:[%s1047_s17 + $0x180] sm:$0xff] %v437_v22  ;;  %v377_v29 = vmax.f32 %v769_v24, 1e-05  ;;  %790 = vpow2.f32 %v323_v20 }
  0x86   : > { %v439_v28 = vmin.f32 %v375_v23, 1000000.0  ;;  %v773_v30 = vpop.eup %772  ;;  %502 = vst [vmem:[%s1047_s17 + $0x188] sm:$0xff] %v438_v25  ;;  %v440_v31 = vmin.f32 %v376_v26, 1000000.0 }
  0x87   : > { %v378_v32 = vmax.f32 %v771_v27, 1e-05  ;;  %v775_v33 = vpop.eup %774  ;;  %v441_v34 = vmin.f32 %v377_v29, 1000000.0  ;;  %v379_v35 = vmax.f32 %v773_v30, 1e-05 }
  0x88   : > { %503 = vst [vmem:[%s1047_s17 + $0x190] sm:$0xff] %v439_v28  ;;  %v777_v36 = vpop.eup %776  ;;  %504 = vst [vmem:[%s1047_s17 + $0x198] sm:$0xff] %v440_v31  ;;  %v380_v38 = vmax.f32 %v775_v33, 1e-05 }
  0x89   : > { %v442_v37 = vmin.f32 %v378_v32, 1000000.0  ;;  %v779_v39 = vpop.eup %778  ;;  %505 = vst [vmem:[%s1047_s17 + $0x1a0] sm:$0xff] %v441_v34  ;;  %v443_v40 = vmin.f32 %v379_v35, 1000000.0 }
  0x8a   : > { %v381_v41 = vmax.f32 %v777_v36, 1e-05  ;;  %v781_v42 = vpop.eup %780  ;;  %v444_v43 = vmin.f32 %v380_v38, 1000000.0  ;;  %v382_v44 = vmax.f32 %v779_v39, 1e-05 }
  0x8b   : > { %506 = vst [vmem:[%s1047_s17 + $0x1a8] sm:$0xff] %v442_v37  ;;  %v783_v45 = vpop.eup %782  ;;  %507 = vst [vmem:[%s1047_s17 + $0x1b0] sm:$0xff] %v443_v40  ;;  %v383_v47 = vmax.f32 %v781_v42, 1e-05 }
  0x8c   : > { %v445_v46 = vmin.f32 %v381_v41, 1000000.0  ;;  %v785_v48 = vpop.eup %784  ;;  %508 = vst [vmem:[%s1047_s17 + $0x1b8] sm:$0xff] %v444_v43  ;;  %v446_v49 = vmin.f32 %v382_v44, 1000000.0 }
  0x8d   : > { %v384_v50 = vmax.f32 %v783_v45, 1e-05  ;;  %v787_v51 = vpop.eup %786  ;;  %v447_v52 = vmin.f32 %v383_v47, 1000000.0  ;;  %v385_v53 = vmax.f32 %v785_v48, 1e-05 }
  0x8e   : > { %509 = vst [vmem:[%s1047_s17 + $0x1c0] sm:$0xff] %v445_v46  ;;  %v789_v54 = vpop.eup %788  ;;  %510 = vst [vmem:[%s1047_s17 + $0x1c8] sm:$0xff] %v446_v49  ;;  %v386_v56 = vmax.f32 %v787_v51, 1e-05 }
  0x8f   : > { %v448_v55 = vmin.f32 %v384_v50, 1000000.0  ;;  %v791_v57 = vpop.eup %790  ;;  %511 = vst [vmem:[%s1047_s17 + $0x1d0] sm:$0xff] %v447_v52  ;;  %v449_v58 = vmin.f32 %v385_v53, 1000000.0 }
  0x90   : > { %v387_v59 = vmax.f32 %v789_v54, 1e-05  ;;  %v450_v60 = vmin.f32 %v386_v56, 1000000.0  ;;  %v388_v61 = vmax.f32 %v791_v57, 1e-05 }
  0x91   : > { %512 = vst [vmem:[%s1047_s17 + $0x1d8] sm:$0xff] %v448_v55  ;;  %513 = vst [vmem:[%s1047_s17 + $0x1e0] sm:$0xff] %v449_v58 }
  0x92   : > { %v451_v62 = vmin.f32 %v387_v59, 1000000.0  ;;  %514 = vst [vmem:[%s1047_s17 + $0x1e8] sm:$0xff] %v450_v60  ;;  %v452_v63 = vmin.f32 %v388_v61, 1000000.0 }
  0x94   : > { %515 = vst [vmem:[%s1047_s17 + $0x1f0] sm:$0xff] %v451_v62  ;;  %516 = vst [vmem:[%s1047_s17 + $0x1f8] sm:$0xff] %v452_v63 }
  0x95   : > { %835 = shalt.err (!%p832_p4)
}
  0x96   : > { %s836_s5 = scalar_lea.hbm %s1154_s29, 8192  ;;  %s840_s14 = scalar_lea.hbm %s1201_s1, 16384 }
  0x97   : > { %p837_p5 = scmp.ne.s32.totalorder %s1154_s29, %s836_s5  ;;  %p841_p0 = scmp.lt.u32.totalorder %s1154_s29, %s1201_s1 }
  0x98   : > { %p842_p1 = scmp.lt.u32.totalorder %s840_s14, %s836_s5  ;;  %p844_p6 = scmp.lt.u32.totalorder %s836_s5, %s1154_s29 }
  0x99   : > { %p838_p8 = pnand %p837_p5, %p1210_p11 }
  0x9a   : > { %p843_p3 = por %p842_p1, %p841_p0 }
  0x9b   : > { %p839_p9 = pneg %p838_p8 }
  0x9c   : > { %p845_p12 = por %p844_p6, %p843_p3 }
  0x9e   : > { %p846_p13 = pnand %p845_p12, %p839_p9 }
  0xa0   : > { %849 = shalt.err (!%p846_p13)
}
  0xa1   : > { %620 = dma.vmem_to_hbm [thread:$0]  (%p1210_p11), %s1156_s26, 8192, %s1154_s29, %s518_s10  }
  0xa2 PF: > { %s544_s21 = sand.u32 1, %s876_s6   ;;  %p1211_p7 = scmp.ne.s32.totalorder %s1206_s19, 0 }
  0xa3   : > { %p1212_p10 = scmp.ge.s32.totalorder %s888_s9, 2  ;;  %s545_s22 = scalar_lea.sflag [#allocation4], %s544_s21 }
  0xa5   : > { %p627_p2 = pnand %p1212_p10, %p1211_p7 }
  0xa7   : > { %871 = dma.done.wait (!%p627_p2), %s545_s22, 8192  }
  0xa8   : > { %873 = vsyncadd (!%p627_p2), %s545_s22, 4294959104  ;;  %p14_p4 = scmp.ge.s32.totalorder %s927_s12, 4   ;;  %s1213_s6 = smov %s880_s7 }
  0xa9   : > { %s1214_s7 = smov %s884_s8  ;;  %s1215_s8 = smov %s939_s15 }
  0xaa   : > { %s1216_s9 = smov %s927_s12  ;;  %16 = sbr.rel (!%p14_p4) target bundleno = 5 (0x5), region = 69 }
  0xb1   :  { %550 = vsyncpa [#allocation3], 1 }
  0xb2   :  { %552 = vsyncpa [#allocation3 + $0x1], 1 }
  0xb3   :  { %553 = vsyncpa [#allocation4], 1 }
  0xb4   :  { %555 = vsyncpa [#allocation4 + $0x1], 1 }

</bundles_post_ra>
